<compile_context>
chip_gen: v5e
topology: v5e:2x2
jax: 0.10.0
libtpu: 0.0.40
codegen_flags: <defaults>
</compile_context>

<pallas_src>
import functools

import jax
import jax.numpy as jnp
from jax.experimental import pallas as pl
from jax.experimental.pallas import tpu as pltpu


def _round_up(x, m):
    return (x + m - 1) // m * m


def _patch_embed_kernel(x_ref, w_ref, b_ref, o_ref):
    # x_ref: (TM, K_pad) bf16, w_ref: (K_pad, E_pad) bf16, b_ref: (1, E_pad) f32,
    # o_ref: (TM, E_pad) out_dtype.  MXU matmul, f32 accumulation, bias add,
    # single cast on the final store.
    acc = jnp.dot(x_ref[...], w_ref[...], preferred_element_type=jnp.float32)
    o_ref[...] = (acc + b_ref[...]).astype(o_ref.dtype)


def _choose_tm(M, num_patches, n_imgs, target):
    """Pick a row tile that divides M exactly (no pad / slice copies).

    Prefers multiples of 16 (bf16 sublane packing), TM <= target, and at least
    two grid tiles so v7x's two TensorCores both get work.  Falls back to a
    single full-M tile (block == full array dims is always legal).
    """
    cands = sorted({g * num_patches for g in range(1, n_imgs + 1) if n_imgs % g == 0})
    for need_two_tiles in (True, False):
        ok = [tm for tm in cands
              if tm <= target and tm % 16 == 0 and (tm < M or not need_two_tiles)]
        if ok:
            return max(ok)
    return M


def _vmem_limit_bytes():
    # Generation-aware scoped-VMEM limit: leave ~16 MiB headroom for compiler
    # scratch/spill.  v7x (64 MiB/TC) -> 48 MiB; v5e/v6e (128 MiB) -> 112 MiB.
    try:
        cap = pltpu.get_tpu_info().vmem_capacity_bytes
    except Exception:
        cap = 64 * 1024 * 1024
    return int(max(32 * 1024 * 1024,
                   min(cap - 16 * 1024 * 1024, 112 * 1024 * 1024)))


def _patch_matmul(x_patches, w, b, num_patches, n_imgs, *, out_dtype, tm_target):
    """(M, K) @ (K, E) + b, row-tiled; weight/bias stay VMEM-resident."""
    M, K = x_patches.shape
    _, E = w.shape

    # Lane-dense alignment: pad E (output lanes) and, if needed, K (contraction
    # lanes) to multiples of 128.  Weight/bias pads are tiny; the x K-pad (rare)
    # fuses into the same XLA copy that builds the patch matrix.
    E_pad = _round_up(E, 128)
    K_pad = _round_up(K, 128)
    if E_pad != E:
        w = jnp.pad(w, ((0, 0), (0, E_pad - E)))
        b = jnp.pad(b, ((0, 0), (0, E_pad - E)))
    if K_pad != K:
        w = jnp.pad(w, ((0, K_pad - K), (0, 0)))
        x_patches = jnp.pad(x_patches, ((0, 0), (0, K_pad - K)))

    TM = _choose_tm(M, num_patches, n_imgs, tm_target)
    grid = (M // TM,)

    out = pl.pallas_call(
        _patch_embed_kernel,
        out_shape=jax.ShapeDtypeStruct((M, E_pad), out_dtype),
        grid=grid,
        in_specs=[
            pl.BlockSpec((TM, K_pad), lambda i: (i, 0)),
            pl.BlockSpec((K_pad, E_pad), lambda i: (0, 0)),   # resident across grid
            pl.BlockSpec((1, E_pad), lambda i: (0, 0)),       # resident across grid
        ],
        out_specs=pl.BlockSpec((TM, E_pad), lambda i: (i, 0)),
        compiler_params=pltpu.CompilerParams(
            dimension_semantics=("parallel",),     # shard row tiles over TCs (v7x)
            vmem_limit_bytes=_vmem_limit_bytes(),
        ),
        cost_estimate=pl.CostEstimate(
            flops=2 * M * K_pad * E_pad,
            bytes_accessed=(M * K_pad * x_patches.dtype.itemsize
                            + K_pad * E_pad * w.dtype.itemsize
                            + E_pad * 4
                            + M * E_pad * jnp.dtype(out_dtype).itemsize),
            transcendentals=0,
        ),
    )(x_patches, w, b)
    return out   # (M, E_pad), no row slicing needed


def patch_embed_forward(x, weight, bias, patch_size, *, tm=1024,
                        out_dtype=jnp.bfloat16):
    """Equivalent of PatchEmbed.forward.

    Args:
      x: (B, C, T, H, W) float32
      weight: Conv2d weight, (E, C, P, P)
      bias: Conv2d bias, (E,)
      patch_size: P
      tm: target row-tile size (rows of the patch matrix per grid step)
      out_dtype: token dtype (bf16 default; use jnp.float32 for f32 parity)
    Returns:
      (tokens, T, W_out) where tokens is (B*T, num_patches, E).
    """
    B, C, T, H, W = x.shape
    E = weight.shape[0]
    P = patch_size
    Hp, Wp = H // P, W // P
    N = B * T
    num_patches = Hp * Wp
    M = N * num_patches
    K = C * P * P

    # Stride==kernel Conv2d truncates ragged borders (VALID); no-op slice when
    # H, W are multiples of P.
    x = x[:, :, :, :Hp * P, :Wp * P]

    # Single relayout pass: (B,C,T,H,W) f32 -> (M, K) bf16 patch matrix, with the
    # bf16 cast fused into the same copy (one f32 read + one bf16 write instead
    # of two separate transpose passes).  Row order (b, t, hp, wp) and column
    # order (c, ph, pw) match PyTorch's permute/reshape + Conv2d weight layout.
    x = x.reshape(B, C, T, Hp, P, Wp, P)
    x = jnp.transpose(x, (0, 2, 3, 5, 1, 4, 6))        # (B, T, Hp, Wp, C, P, P)
    x_patches = x.reshape(M, K).astype(jnp.bfloat16)

    # Conv2d weight (E, C, P, P) -> (K, E) bf16 (small); bias -> (1, E) f32.
    w2d = weight.reshape(E, K).T.astype(jnp.bfloat16)
    b2d = bias.reshape(1, E).astype(jnp.float32)

    out = _patch_matmul(x_patches, w2d, b2d, num_patches, N,
                        out_dtype=out_dtype, tm_target=tm)   # (M, E_pad)
    out = out.reshape(N, num_patches, -1)
    if out.shape[-1] != E:
        out = out[..., :E]   # only when E is not already a multiple of 128
    return out, T, Wp


def _reference(x, weight, bias, patch_size):
    """Pure-JAX f32 reference (lax conv) mirroring the PyTorch module."""
    B, C, T, H, W = x.shape
    xr = jnp.transpose(x, (0, 2, 1, 3, 4)).reshape(-1, C, H, W)
    y = jax.lax.conv_general_dilated(
        xr, weight,
        window_strides=(patch_size, patch_size),
        padding="VALID",
        dimension_numbers=("NCHW", "OIHW", "NCHW"),
    ) + bias.reshape(1, -1, 1, 1)
    N, E, Ho, Wo = y.shape
    y = y.reshape(N, E, Ho * Wo).transpose(0, 2, 1)
    return y, T, Wo


if __name__ == "__main__":
    # Small shapes consistent with the module: B=2, C=4, T=2, H=W=16, P=8, E=32
    B, C, T, H, W = 2, 4, 2, 16, 16
    patch_size = 8
    embed_dim = 32

    key = jax.random.PRNGKey(0)
    kx, kw, kb = jax.random.split(key, 3)
    x = jax.random.normal(kx, (B, C, T, H, W), dtype=jnp.float32)
    weight = jax.random.normal(kw, (embed_dim, C, patch_size, patch_size),
                               dtype=jnp.float32) * 0.02
    bias = jax.random.normal(kb, (embed_dim,), dtype=jnp.float32) * 0.02

    fwd = jax.jit(functools.partial(patch_embed_forward, patch_size=patch_size))
    tokens, t_out, w_out = fwd(x, weight, bias)
    tokens = jax.block_until_ready(tokens)

    ref_tokens, _, ref_w = _reference(x, weight, bias, patch_size)
    assert tokens.shape == (B * T, (H // patch_size) * (W // patch_size), embed_dim)
    assert int(t_out) == T and int(w_out) == ref_w
    # bf16 inputs/outputs with f32 accumulation -> loosened tolerance vs f32 ref.
    assert jnp.allclose(tokens.astype(jnp.float32), ref_tokens, atol=2e-2, rtol=2e-2)

    print("KERNEL_OK")
</pallas_src>

<mosaic_0001>
module attributes {stable_mosaic.version = 11 : i64} {
  func.func @_patch_embed_kernel(%arg0: i32, %arg1: memref<16x256xbf16, #tpu.memory_space<vmem>>, %arg2: memref<256x128xbf16, #tpu.memory_space<vmem>>, %arg3: memref<1x128xf32, #tpu.memory_space<vmem>>, %arg4: memref<16x128xbf16, #tpu.memory_space<vmem>>) attributes {dimension_semantics = [#tpu.dimension_semantics<parallel>], iteration_bounds = array<i64: 1>, scalar_prefetch = 0 : i64, scratch_operands = 0 : i64, tpu.core_type = #tpu.core_type<tc>, window_params = [{transform_indices = @transform_0, window_bounds = array<i64: 16, 256>}, {pipeline_mode = #tpu.pipeline_mode<synchronous>, transform_indices = @transform_1, window_bounds = array<i64: 256, 128>}, {pipeline_mode = #tpu.pipeline_mode<synchronous>, transform_indices = @transform_2, window_bounds = array<i64: 1, 128>}, {transform_indices = @transform_3, window_bounds = array<i64: 16, 128>}]} {
    %c0 = arith.constant 0 : index
    %c0_0 = arith.constant 0 : index
    %0 = vector.load %arg1[%c0, %c0_0] : memref<16x256xbf16, #tpu.memory_space<vmem>>, vector<16x256xbf16>
    %c0_1 = arith.constant 0 : index
    %c0_2 = arith.constant 0 : index
    %1 = vector.load %arg2[%c0_1, %c0_2] : memref<256x128xbf16, #tpu.memory_space<vmem>>, vector<256x128xbf16>
    %cst = arith.constant dense<0.000000e+00> : vector<16x128xf32>
    %2 = tpu.matmul %0, %1, %cst {dimension_numbers = #tpu.dot_dimension_numbers<[1], [0], [0], [1], [0, 0, 1, 1], [], []>} : vector<16x256xbf16>, vector<256x128xbf16>, vector<16x128xf32> -> vector<16x128xf32>
    %c0_3 = arith.constant 0 : index
    %c0_4 = arith.constant 0 : index
    %3 = vector.load %arg3[%c0_3, %c0_4] : memref<1x128xf32, #tpu.memory_space<vmem>>, vector<1x128xf32>
    %4 = vector.broadcast %3 : vector<1x128xf32> to vector<16x128xf32>
    %5 = arith.addf %2, %4 : vector<16x128xf32>
    %6 = arith.truncf %5 : vector<16x128xf32> to vector<16x128xbf16>
    %c0_5 = arith.constant 0 : index
    %c0_6 = arith.constant 0 : index
    %7 = vector.load %arg4[%c0_5, %c0_6] : memref<16x128xbf16, #tpu.memory_space<vmem>>, vector<16x128xbf16>
    tpu.vector_store %arg4[%c0_5, %c0_6], %6 {strides = array<i32>} : memref<16x128xbf16, #tpu.memory_space<vmem>>, vector<16x128xbf16>,
    return
  }
  func.func @transform_0(%arg0: i32) -> (i32, i32) {
    %c0_i32 = arith.constant 0 : i32
    %c0_i32_0 = arith.constant 0 : i32
    return %arg0, %c0_i32 : i32, i32
  }
  func.func @transform_1(%arg0: i32) -> (i32, i32) {
    %c0_i32 = arith.constant 0 : i32
    %c0_i32_0 = arith.constant 0 : i32
    %c0_i32_1 = arith.constant 0 : i32
    return %c0_i32, %c0_i32_0 : i32, i32
  }
  func.func @transform_2(%arg0: i32) -> (i32, i32) {
    %c0_i32 = arith.constant 0 : i32
    %c0_i32_0 = arith.constant 0 : i32
    %c0_i32_1 = arith.constant 0 : i32
    return %c0_i32, %c0_i32_0 : i32, i32
  }
  func.func @transform_3(%arg0: i32) -> (i32, i32) {
    %c0_i32 = arith.constant 0 : i32
    %c0_i32_0 = arith.constant 0 : i32
    return %arg0, %c0_i32 : i32, i32
  }
}

</mosaic_0001>

<bundles_post_ra>
// kernel: patch_embed_forward.1
= control target key start
LH: loop header
LB: loop body
LE: loop exit
PB: predicated region body
PF: predicated region fallthrough
CT: control target
= control target key end

     0   :  { %s423_s0 = inlined_call_operand.vmem [shape: bf16[16,256], index: 0, kind: input, shape index: {}]   ;;  %s424_s1 = inlined_call_operand.vmem [shape: bf16[256,128], index: 1, kind: input, shape index: {}]   ;;  %s425_s2 = inlined_call_operand.vmem [shape: f32[1,128], index: 2, kind: input, shape index: {}]   ;;  %s426_s3 = inlined_call_operand.hbm [shape: bf16[16,128], index: 3, kind: output, shape index: {}]  }
   0x1   :  { %v290_v0 = vld [vmem:[%s424_s1 + $0x38] sm:$0xff]  ;;  %v289_v2 = vld [vmem:[%s424_s1 + $0x30] sm:$0xff]  ;;  %v288_v4 = vld [vmem:[%s424_s1 + $0x28] sm:$0xff] }
   0x2   :  { %v298_v1 = vld [vmem:[%s424_s1 + $0x78] sm:$0xff]  ;;  %159 = vmatpush.bf16.msra.mxu0 %v290_v0  ;;  %v297_v3 = vld [vmem:[%s424_s1 + $0x70] sm:$0xff]  ;;  %v296_v5 = vld [vmem:[%s424_s1 + $0x68] sm:$0xff] }
   0x3   :  { %173 = vmatpush.bf16.msra.mxu1 %v298_v1 }
   0x6   :  { %160 = vmatpush.bf16.msra.mxu0 %v289_v2 }
   0x7   :  { %174 = vmatpush.bf16.msra.mxu1 %v297_v3 }
   0x8   :  { %8 = vsyncpa [#allocation3], 0  ;;  %v287_v6 = vld [vmem:[%s424_s1 + $0x20] sm:$0xff]  ;;  %v286_v8 = vld [vmem:[%s424_s1 + $0x18] sm:$0xff]  ;;  %s334_s26 = smov [#allocation2]   ;;  %s335_s30 = smov 64  }
   0x9   :  { %v295_v7 = vld [vmem:[%s424_s1 + $0x60] sm:$0xff]  ;;  %v294_v9 = vld [vmem:[%s424_s1 + $0x58] sm:$0xff]  ;;  %v285_v10 = vld [vmem:[%s424_s1 + $0x10] sm:$0xff]  ;;  %s195_s27 = sshll.u32 %s334_s26, 4  ;;  %s336_s4 = smov 4   ;;  %s196_s27 = int_to_ptr.vmem [resolvable:$true] %s195_s27 }
   0xa   :  { %161 = vmatpush.bf16.msra.mxu0 %v288_v4  ;;  %v293_v11 = vld [vmem:[%s424_s1 + $0x50] sm:$0xff]  ;;  %v284_v12 = vld [vmem:[%s424_s1 + $0x8] sm:$0xff]  ;;  %v283_v14 = vld [vmem:[%s424_s1] sm:$0xff] }
   0xb   :  { %175 = vmatpush.bf16.msra.mxu1 %v296_v5  ;;  %v292_v13 = vld [vmem:[%s424_s1 + $0x48] sm:$0xff]  ;;  %v291_v15 = vld [vmem:[%s424_s1 + $0x40] sm:$0xff] }
   0xc   :  { %v211_v16 = vld [vmem:[%s423_s0] sm:$0xf]  ;;  %v282_v17 = vld [vmem:[%s423_s0 + $0x4] sm:$0xf0]  ;;  %v281_v18 = vld [vmem:[%s423_s0 + $0x4] sm:$0xf] }
   0xd   :  { %v213_v19 = vld [vmem:[%s423_s0 + $0x8] sm:$0xf0]  ;;  %v212_v20 = vor.u32 %v282_v17, %v211_v16  ;;  %v307_v24 = vld [vmem:[%s425_s2] ss:$0 sm:$0xff]  ;;  %s197_s0 = sshll.u32 %s426_s3, 4  ;;  %s198_s0 = int_to_ptr.hbm [resolvable:$true] %s197_s0 }
   0xe   :  { %162 = vmatpush.bf16.msra.mxu0 %v287_v6  ;;  %v216_v21 = vor.u32 %v281_v18, %v213_v19 }
   0xf   :  { %176 = vmatpush.bf16.msra.mxu1 %v295_v7 }
  0x12   :  { %163 = vmatpush.bf16.msra.mxu0 %v286_v8 }
  0x13   :  { %177 = vmatpush.bf16.msra.mxu1 %v294_v9 }
  0x16   :  { %164 = vmatpush.bf16.msra.mxu0 %v285_v10 }
  0x17   :  { %178 = vmatpush.bf16.msra.mxu1 %v293_v11 }
  0x1a   :  { %165 = vmatpush.bf16.msra.mxu0 %v284_v12 }
  0x1b   :  { %179 = vmatpush.bf16.msra.mxu1 %v292_v13 }
  0x1e   :  { %166 = vmatpush.bf16.msra.mxu0 %v283_v14 }
  0x1f   :  { %180 = vmatpush.bf16.msra.mxu1 %v291_v15 }
  0x21   :  { %167 = vmatmul.bf16.vlgmr.msra.gmra.mxu0 %v212_v20 }
  0x22   :  { %181 = vmatmul.bf16.vlgmr.msra.gmra.mxu1 %v216_v21 }
  0x9e   :  { %v168_v22 = vpop.f32.mrf.mxu0 }
  0x9f   :  { %v182_v23 = vpop.f32.mrf.mxu1  ;;  %v169_v25 = vadd.f32 %v307_v24, %v168_v22 }
  0xa1   :  { %v183_v29 = vadd.f32 %v182_v23, %v169_v25 }
  0xa6   :  { %v170_v26 = vpop.f32.mrf.mxu0 }
  0xa7   :  { %v171_v27 = vadd.f32 %v307_v24, %v170_v26  ;;  %v184_v28 = vpop.f32.mrf.mxu1 }
  0xa9   :  { %v185_v30 = vadd.f32 %v184_v28, %v171_v27 }
  0xab   :  { %v302_v31 = vpack.c.bf16 %v185_v30, %v183_v29 }
  0xad   :  { %303 = vst [vmem:[#allocation2] sm:$0xff] %v302_v31  }
  0xae   :  { %203 = dma.vmem_to_hbm [thread:$0]  %s196_s27, 128, %s198_s0, [#allocation3], %s335_s30, %s335_s30, %s336_s4  }
  0xaf   :  { %332 = dma.done.wait [#allocation3], 128  }
  0xb0   :  { %333 = vsyncadd [#allocation3], 4294967168 }
  0xb1   :  { %208 = vsyncpa [#allocation3], 1 }

</bundles_post_ra>
